<compile_context>
chip_gen: v6e
topology: v6e:2x2x1
jax: 0.10.0
libtpu: 0.0.40
codegen_flags: <defaults>
</compile_context>

<pallas_src>
import functools

import jax
import jax.numpy as jnp
import numpy as np
from jax import lax
from jax.experimental import pallas as pl
from jax.experimental.pallas import tpu as pltpu

# Synthetic vocabulary sizes (NEUTRAL_IDS / NONNEUTRAL_IDS are not available;
# their lengths only set the table's first dimension).
NUM_NEUTRAL_IDS = 16
NUM_NONNEUTRAL_IDS = 128


def _round_up(x, m):
    return ((x + m - 1) // m) * m


def _cdiv(a, b):
    return -(-a // b)


def _embedding_kernel(ids_ref, w_ref, out_ref, *, n_vocab, pack, embed_size):
    """One grid step: gather a tile of embeddings via one-hot matmuls.

    ids_ref : (R, pack) int32   -- `pack` ids per packed output row
    w_ref   : (V, E) float32    -- raw table (sigmoid already applied in the
                                   wrapper); constant index_map => resident.
    out_ref : (R, pack*E) f32   -- lane-dense packed output rows
    """
    ids = ids_ref[...]                                    # (R, P) int32
    rows = ids.shape[0]

    # Fold OOB handling into the small id array: -1 never matches the iota,
    # so invalid ids produce an all-zero embedding row.
    ids = jnp.where((ids >= 0) & (ids < n_vocab), ids, -1)

    col = lax.broadcasted_iota(jnp.int32, (rows, n_vocab), 1)   # (R, V), once
    w = w_ref[...]                                              # (V, E)

    # Per band: one (R, V) compare (single pass over the data) and one
    # (R, V) x (V, E) MXU gather.  Total work: T*V compares, 2*T*V*E FLOPs.
    parts = []
    for k in range(pack):                                 # small static unroll
        one_hot = (ids[:, k:k + 1] == col).astype(jnp.float32)       # (R, V)
        parts.append(jnp.dot(one_hot, w, preferred_element_type=jnp.float32))

    # Merge the bands into lanes and store once, full-width (unmasked vst).
    out_ref[...] = jnp.concatenate(parts, axis=-1).astype(out_ref.dtype)


def starcraft_unit_embedding(x, embed_param, *, is_weight_logit=False,
                             row_tile=8192):
    """Pallas equivalent of StarCraftUnitEmbedding.forward.

    x           : int array of unit ids, any shape (e.g. (B, S)).
    embed_param : (n_vocab, embed_size) float32 embedding parameter.
    returns     : float32 array of shape x.shape + (embed_size,).
    """
    n_vocab, embed_size = embed_param.shape

    # Hoisted: sigmoid applied once per forward call, not once per grid step.
    w_eff = jax.nn.sigmoid(embed_param) if is_weight_logit else embed_param
    w_eff = w_eff.astype(jnp.float32)

    orig_shape = x.shape
    ids_flat = jnp.asarray(x).reshape(-1).astype(jnp.int32)
    n = ids_flat.shape[0]
    if n == 0:
        return jnp.zeros((*orig_shape, embed_size), jnp.float32)

    # Lane-dense packing: `pack` embeddings side by side per output row so the
    # output block's last dim reaches 256 lanes (fills MXU-N on v6e, keeps the
    # writeback store unmasked).  Unroll capped to keep compile time sane.
    if embed_size < 128 and 128 % embed_size == 0:
        pack = min(256 // embed_size, 16)
    else:
        pack = 1   # TODO(synk): E not dividing 128 falls back to narrow stores
    packed_e = pack * embed_size

    align = pack * 8                      # packed rows stay a multiple of 8 sublanes
    n_pad_min = _round_up(n, align)

    # Tile policy: a single step for small inputs; otherwise an EVEN number of
    # steps (each <= row_tile ids) so both v7x TensorCores get equal work.
    if n_pad_min <= max(align, 1024):
        steps = 1
    else:
        steps = max(2, _cdiv(n_pad_min, max(row_tile, align)))
        steps += steps % 2                # force even for 2-TC balance
    tile = _round_up(_cdiv(n_pad_min, steps), align)
    n_pad = tile * steps

    if n_pad != n:
        # padded ids are 0 (valid row); their rows are sliced off below.
        ids_flat = jnp.pad(ids_flat, (0, n_pad - n))
    ids_packed = ids_flat.reshape(n_pad // pack, pack)

    rows_per_tile = tile // pack

    kernel = functools.partial(_embedding_kernel, n_vocab=n_vocab, pack=pack,
                               embed_size=embed_size)

    out_packed = pl.pallas_call(
        kernel,
        out_shape=jax.ShapeDtypeStruct((n_pad // pack, packed_e), jnp.float32),
        grid_spec=pltpu.PrefetchScalarGridSpec(
            num_scalar_prefetch=0,
            grid=(steps,),
            in_specs=[
                # packed ids: tile along packed rows
                pl.BlockSpec((rows_per_tile, pack), lambda i: (i, 0)),
                # raw (V, E) table: constant block index -> stays resident
                pl.BlockSpec((n_vocab, embed_size), lambda i: (0, 0)),
            ],
            out_specs=pl.BlockSpec((rows_per_tile, packed_e), lambda i: (i, 0)),
        ),
        compiler_params=pltpu.CompilerParams(
            dimension_semantics=("parallel",)),
    )(ids_packed, w_eff)

    # Packed (n_pad/pack, pack*E) has identical row-major bytes as (n_pad, E).
    out_flat = out_packed.reshape(n_pad, embed_size)[:n]
    return out_flat.reshape(*orig_shape, embed_size)


def make_embed_param(key, n_vocab, embed_size, *, is_weight_logit=False):
    """Deterministic synthetic parameter init mirroring the module's __init__.

    The module initializes with ones (optionally through
    _check_logit = logit(clamp(., eps, 1-eps))).  All-ones makes the gather
    untestable, so we use a deterministic random table of the same shape and
    apply the same _check_logit transform in the logit case.
    """
    if is_weight_logit:
        p = jax.random.uniform(key, (n_vocab, embed_size), jnp.float32,
                               minval=0.05, maxval=0.95)
        eps = jnp.finfo(jnp.float32).eps
        p = jnp.clip(p, eps, 1.0 - eps)
        return jnp.log(p) - jnp.log1p(-p)
    else:
        return jax.random.normal(key, (n_vocab, embed_size), jnp.float32)


if __name__ == "__main__":
    key = jax.random.PRNGKey(0)
    k_ids, k_ids_big, k_w_plain, k_w_logit = jax.random.split(key, 4)

    n_vocab = NUM_NONNEUTRAL_IDS        # is_neutral=False branch
    embed_size = 32

    # Small module-shaped input: (B, S) int32 ids in [0, n_vocab)
    batch, seq = 2, 8
    x_small = jax.random.randint(k_ids, (batch, seq), 0, n_vocab, dtype=jnp.int32)
    # A larger input to exercise the multi-step (even) grid + padding path.
    x_big = jax.random.randint(k_ids_big, (4, 600), 0, n_vocab, dtype=jnp.int32)

    ok = True
    for is_weight_logit, k_w in ((False, k_w_plain), (True, k_w_logit)):
        embed_param = make_embed_param(k_w, n_vocab, embed_size,
                                       is_weight_logit=is_weight_logit)
        w_table = jax.nn.sigmoid(embed_param) if is_weight_logit else embed_param

        for x in (x_small, x_big):
            out = starcraft_unit_embedding(x, embed_param,
                                           is_weight_logit=is_weight_logit)
            out = jax.block_until_ready(out)

            # Pure-JAX reference: F.embedding == row gather (after optional sigmoid).
            ref = jnp.take(w_table, x, axis=0)

            assert out.shape == x.shape + (embed_size,)
            assert out.dtype == jnp.float32
            ok &= bool(np.allclose(np.asarray(out), np.asarray(ref),
                                   rtol=1e-6, atol=1e-6))

    if ok:
        print("KERNEL_OK")
</pallas_src>

<mosaic_0001>
module attributes {stable_mosaic.version = 11 : i64} {
  func.func @_embedding_kernel(%arg0: i32, %arg1: memref<8x8xi32, #tpu.memory_space<vmem>>, %arg2: memref<128x32xf32, #tpu.memory_space<vmem>>, %arg3: memref<8x256xf32, #tpu.memory_space<vmem>>) attributes {dimension_semantics = [#tpu.dimension_semantics<parallel>], iteration_bounds = array<i64: 1>, scalar_prefetch = 0 : i64, scratch_operands = 0 : i64, tpu.core_type = #tpu.core_type<tc>, window_params = [{transform_indices = @transform_0, window_bounds = array<i64: 8, 8>}, {pipeline_mode = #tpu.pipeline_mode<synchronous>, transform_indices = @transform_1, window_bounds = array<i64: 128, 32>}, {transform_indices = @transform_2, window_bounds = array<i64: 8, 256>}]} {
    %c0 = arith.constant 0 : index
    %c0_0 = arith.constant 0 : index
    %0 = vector.load %arg1[%c0, %c0_0] : memref<8x8xi32, #tpu.memory_space<vmem>>, vector<8x8xi32>
    %c0_i32 = arith.constant 0 : i32
    %1 = vector.broadcast %c0_i32 : i32 to vector<8x8xi32>
    %2 = arith.cmpi sge, %0, %1 : vector<8x8xi32>
    %c128_i32 = arith.constant 128 : i32
    %3 = vector.broadcast %c128_i32 : i32 to vector<8x8xi32>
    %4 = arith.cmpi slt, %0, %3 : vector<8x8xi32>
    %5 = arith.andi %2, %4 : vector<8x8xi1>
    %c-1_i32 = arith.constant -1 : i32
    %6 = vector.broadcast %c-1_i32 : i32 to vector<8x8xi32>
    %7 = arith.select %5, %0, %6 : vector<8x8xi1>, vector<8x8xi32>
    %8 = tpu.iota {dimensions = array<i32: 1>} : vector<8x128xi32>
    %c0_1 = arith.constant 0 : index
    %c0_2 = arith.constant 0 : index
    %9 = vector.load %arg2[%c0_1, %c0_2] : memref<128x32xf32, #tpu.memory_space<vmem>>, vector<128x32xf32>
    %10 = vector.extract_strided_slice %7 {offsets = [0, 0], sizes = [8, 1], strides = [1, 1]} : vector<8x8xi32> to vector<8x1xi32>
    %11 = vector.broadcast %10 : vector<8x1xi32> to vector<8x128xi32>
    %12 = arith.cmpi eq, %11, %8 : vector<8x128xi32>
    %13 = arith.extui %12 : vector<8x128xi1> to vector<8x128xi32>
    %14 = arith.sitofp %13 : vector<8x128xi32> to vector<8x128xf32>
    %cst = arith.constant dense<0.000000e+00> : vector<8x32xf32>
    %15 = tpu.matmul %14, %9, %cst {dimension_numbers = #tpu.dot_dimension_numbers<[1], [0], [0], [1], [0, 0, 1, 1], [], []>} : vector<8x128xf32>, vector<128x32xf32>, vector<8x32xf32> -> vector<8x32xf32>
    %16 = vector.extract_strided_slice %7 {offsets = [0, 1], sizes = [8, 1], strides = [1, 1]} : vector<8x8xi32> to vector<8x1xi32>
    %17 = vector.broadcast %16 : vector<8x1xi32> to vector<8x128xi32>
    %18 = arith.cmpi eq, %17, %8 : vector<8x128xi32>
    %19 = arith.extui %18 : vector<8x128xi1> to vector<8x128xi32>
    %20 = arith.sitofp %19 : vector<8x128xi32> to vector<8x128xf32>
    %cst_3 = arith.constant dense<0.000000e+00> : vector<8x32xf32>
    %21 = tpu.matmul %20, %9, %cst_3 {dimension_numbers = #tpu.dot_dimension_numbers<[1], [0], [0], [1], [0, 0, 1, 1], [], []>} : vector<8x128xf32>, vector<128x32xf32>, vector<8x32xf32> -> vector<8x32xf32>
    %22 = vector.extract_strided_slice %7 {offsets = [0, 2], sizes = [8, 1], strides = [1, 1]} : vector<8x8xi32> to vector<8x1xi32>
    %23 = vector.broadcast %22 : vector<8x1xi32> to vector<8x128xi32>
    %24 = arith.cmpi eq, %23, %8 : vector<8x128xi32>
    %25 = arith.extui %24 : vector<8x128xi1> to vector<8x128xi32>
    %26 = arith.sitofp %25 : vector<8x128xi32> to vector<8x128xf32>
    %cst_4 = arith.constant dense<0.000000e+00> : vector<8x32xf32>
    %27 = tpu.matmul %26, %9, %cst_4 {dimension_numbers = #tpu.dot_dimension_numbers<[1], [0], [0], [1], [0, 0, 1, 1], [], []>} : vector<8x128xf32>, vector<128x32xf32>, vector<8x32xf32> -> vector<8x32xf32>
    %28 = vector.extract_strided_slice %7 {offsets = [0, 3], sizes = [8, 1], strides = [1, 1]} : vector<8x8xi32> to vector<8x1xi32>
    %29 = vector.broadcast %28 : vector<8x1xi32> to vector<8x128xi32>
    %30 = arith.cmpi eq, %29, %8 : vector<8x128xi32>
    %31 = arith.extui %30 : vector<8x128xi1> to vector<8x128xi32>
    %32 = arith.sitofp %31 : vector<8x128xi32> to vector<8x128xf32>
    %cst_5 = arith.constant dense<0.000000e+00> : vector<8x32xf32>
    %33 = tpu.matmul %32, %9, %cst_5 {dimension_numbers = #tpu.dot_dimension_numbers<[1], [0], [0], [1], [0, 0, 1, 1], [], []>} : vector<8x128xf32>, vector<128x32xf32>, vector<8x32xf32> -> vector<8x32xf32>
    %34 = vector.extract_strided_slice %7 {offsets = [0, 4], sizes = [8, 1], strides = [1, 1]} : vector<8x8xi32> to vector<8x1xi32>
    %35 = vector.broadcast %34 : vector<8x1xi32> to vector<8x128xi32>
    %36 = arith.cmpi eq, %35, %8 : vector<8x128xi32>
    %37 = arith.extui %36 : vector<8x128xi1> to vector<8x128xi32>
    %38 = arith.sitofp %37 : vector<8x128xi32> to vector<8x128xf32>
    %cst_6 = arith.constant dense<0.000000e+00> : vector<8x32xf32>
    %39 = tpu.matmul %38, %9, %cst_6 {dimension_numbers = #tpu.dot_dimension_numbers<[1], [0], [0], [1], [0, 0, 1, 1], [], []>} : vector<8x128xf32>, vector<128x32xf32>, vector<8x32xf32> -> vector<8x32xf32>
    %40 = vector.extract_strided_slice %7 {offsets = [0, 5], sizes = [8, 1], strides = [1, 1]} : vector<8x8xi32> to vector<8x1xi32>
    %41 = vector.broadcast %40 : vector<8x1xi32> to vector<8x128xi32>
    %42 = arith.cmpi eq, %41, %8 : vector<8x128xi32>
    %43 = arith.extui %42 : vector<8x128xi1> to vector<8x128xi32>
    %44 = arith.sitofp %43 : vector<8x128xi32> to vector<8x128xf32>
    %cst_7 = arith.constant dense<0.000000e+00> : vector<8x32xf32>
    %45 = tpu.matmul %44, %9, %cst_7 {dimension_numbers = #tpu.dot_dimension_numbers<[1], [0], [0], [1], [0, 0, 1, 1], [], []>} : vector<8x128xf32>, vector<128x32xf32>, vector<8x32xf32> -> vector<8x32xf32>
    %46 = vector.extract_strided_slice %7 {offsets = [0, 6], sizes = [8, 1], strides = [1, 1]} : vector<8x8xi32> to vector<8x1xi32>
    %47 = vector.broadcast %46 : vector<8x1xi32> to vector<8x128xi32>
    %48 = arith.cmpi eq, %47, %8 : vector<8x128xi32>
    %49 = arith.extui %48 : vector<8x128xi1> to vector<8x128xi32>
    %50 = arith.sitofp %49 : vector<8x128xi32> to vector<8x128xf32>
    %cst_8 = arith.constant dense<0.000000e+00> : vector<8x32xf32>
    %51 = tpu.matmul %50, %9, %cst_8 {dimension_numbers = #tpu.dot_dimension_numbers<[1], [0], [0], [1], [0, 0, 1, 1], [], []>} : vector<8x128xf32>, vector<128x32xf32>, vector<8x32xf32> -> vector<8x32xf32>
    %52 = vector.extract_strided_slice %7 {offsets = [0, 7], sizes = [8, 1], strides = [1, 1]} : vector<8x8xi32> to vector<8x1xi32>
    %53 = vector.broadcast %52 : vector<8x1xi32> to vector<8x128xi32>
    %54 = arith.cmpi eq, %53, %8 : vector<8x128xi32>
    %55 = arith.extui %54 : vector<8x128xi1> to vector<8x128xi32>
    %56 = arith.sitofp %55 : vector<8x128xi32> to vector<8x128xf32>
    %cst_9 = arith.constant dense<0.000000e+00> : vector<8x32xf32>
    %57 = tpu.matmul %56, %9, %cst_9 {dimension_numbers = #tpu.dot_dimension_numbers<[1], [0], [0], [1], [0, 0, 1, 1], [], []>} : vector<8x128xf32>, vector<128x32xf32>, vector<8x32xf32> -> vector<8x32xf32>
    %58 = tpu.concatenate %15, %21, %27, %33, %39, %45, %51, %57 in 1 : vector<8x32xf32>, vector<8x32xf32>, vector<8x32xf32>, vector<8x32xf32>, vector<8x32xf32>, vector<8x32xf32>, vector<8x32xf32>, vector<8x32xf32> -> vector<8x256xf32>
    %c0_10 = arith.constant 0 : index
    %c0_11 = arith.constant 0 : index
    %59 = vector.load %arg3[%c0_10, %c0_11] : memref<8x256xf32, #tpu.memory_space<vmem>>, vector<8x256xf32>
    tpu.vector_store %arg3[%c0_10, %c0_11], %58 {strides = array<i32>} : memref<8x256xf32, #tpu.memory_space<vmem>>, vector<8x256xf32>,
    return
  }
  func.func @transform_0(%arg0: i32) -> (i32, i32) {
    %c0_i32 = arith.constant 0 : i32
    %c0_i32_0 = arith.constant 0 : i32
    return %arg0, %c0_i32 : i32, i32
  }
  func.func @transform_1(%arg0: i32) -> (i32, i32) {
    %c0_i32 = arith.constant 0 : i32
    %c0_i32_0 = arith.constant 0 : i32
    %c0_i32_1 = arith.constant 0 : i32
    return %c0_i32, %c0_i32_0 : i32, i32
  }
  func.func @transform_2(%arg0: i32) -> (i32, i32) {
    %c0_i32 = arith.constant 0 : i32
    %c0_i32_0 = arith.constant 0 : i32
    return %arg0, %c0_i32 : i32, i32
  }
}

</mosaic_0001>

<bundles_post_ra>
// kernel: tpu_custom_call.1
= control target key start
LH: loop header
LB: loop body
LE: loop exit
PB: predicated region body
PF: predicated region fallthrough
CT: control target
= control target key end

     0   :  { %v1170_v1 = vmov 0   ;;  %v1171_v2 = vmov 2   ;;  %v1172_v5 = vmov 0.0   ;;  %s1576_s0 = inlined_call_operand.vmem [shape: s32[8,8], index: 0, kind: input, shape index: {}]   ;;  %s1577_s1 = inlined_call_operand.vmem [shape: f32[128,32], index: 1, kind: input, shape index: {}]   ;;  %s1578_s2 = inlined_call_operand.hbm [shape: f32[8,256], index: 2, kind: output, shape index: {}]  }
   0x1   :  { %v12_v0 = vld [vmem:[%s1576_s0] sm:$0xff]  ;;  %1139 = vset.pattern.permute.xlu0 %v1170_v1  ;;  %1141 = vset.pattern.permute.xlu1 %v1171_v2  ;;  %v1206_v3 = vld [vmem:[%s1577_s1 + $0x78] sm:$0xff]  ;;  %v1213_v6 = vld [vmem:[%s1577_s1 + $0x70] sm:$0xff] }
   0x2   :  { %vm13_vm0 = vcmp.ge.s32.totalorder %v12_v0, 0  ;;  %vm14_vm1 = vcmp.lt.s32.totalorder %v12_v0, 128  ;;  %844 = vmatprep.subr.mxu0 %v1172_v5  ;;  %879 = vmatprep.subr.mxu1 %v1172_v5 }
   0x3   :  { %vm15_vm2 = vmand %vm13_vm0, %vm14_vm1  ;;  %845 = vmatpush3.msra.mxu0 %v1206_v3  ;;  %880 = vmatpush3.msra.mxu1 %v1206_v3 }
   0x4   :  { %v16_v4 = vsel %vm15_vm2, %v12_v0, 4294967295  ;;  %846 = vmatprep.subr.mxu0 %v1172_v5  ;;  %881 = vmatprep.subr.mxu1 %v1172_v5 }
   0x5   :  { %36 = vperm.xlu0 %1139, %v16_v4   ;;  %188 = vperm.xlu1 %1141, %v16_v4  }
   0x6   :  { %7 = vsyncpa [#allocation3], 0  ;;  %847 = vmatpush3.msra.mxu0 %v1213_v6  ;;  %882 = vmatpush3.msra.mxu1 %v1213_v6  ;;  %v1173_v7 = vmov 1   ;;  %v1174_v8 = vmov 3   ;;  %v1224_v9 = vld [vmem:[%s1577_s1 + $0x68] sm:$0xff]  ;;  %v1234_v10 = vld [vmem:[%s1577_s1 + $0x60] sm:$0xff]  ;;  %v17_v27 = vlaneseq }
   0x7   :  { %848 = vmatprep.subr.mxu0 %v1172_v5  ;;  %883 = vmatprep.subr.mxu1 %v1172_v5  ;;  %v1175_v11 = vmov 4   ;;  %v1176_v12 = vmov 5   ;;  %v1240_v13 = vld [vmem:[%s1577_s1 + $0x58] sm:$0xff]  ;;  %v1248_v14 = vld [vmem:[%s1577_s1 + $0x50] sm:$0xff]  ;;  %v1177_v15 = vmov 6   ;;  %v1257_v16 = vld [vmem:[%s1577_s1 + $0x48] sm:$0xff] }
   0x8   :  { %849 = vmatpush3.msra.mxu0 %v1224_v9  ;;  %884 = vmatpush3.msra.mxu1 %v1224_v9  ;;  %v1264_v17 = vld [vmem:[%s1577_s1 + $0x40] sm:$0xff]  ;;  %v1273_v18 = vld [vmem:[%s1577_s1 + $0x38] sm:$0xff]  ;;  %v1178_v19 = vmov 7   ;;  %v1281_v20 = vld [vmem:[%s1577_s1 + $0x30] sm:$0xff]  ;;  %vm1179_vm3 = vmmov 0   ;;  %v1353_v28 = vand.u32 127, %v17_v27 }
   0x9   :  { %1140 = vset.pattern.permute.xlu0 %v1173_v7  ;;  %1142 = vset.pattern.permute.xlu1 %v1174_v8  ;;  %v1290_v21 = vld [vmem:[%s1577_s1 + $0x28] sm:$0xff]  ;;  %v1299_v22 = vld [vmem:[%s1577_s1 + $0x20] sm:$0xff]  ;;  %v1308_v23 = vld [vmem:[%s1577_s1 + $0x18] sm:$0xff]  ;;  %v1180_v30 = vmov 1.0   ;;  %s1182_s13 = smov 64   ;;  %s1183_s14 = smov 96  }
   0xa   :  { %112 = vperm.xlu0 %1140, %v16_v4   ;;  %264 = vperm.xlu1 %1142, %v16_v4   ;;  %v1317_v24 = vld [vmem:[%s1577_s1 + $0x10] sm:$0xff]  ;;  %v1326_v25 = vld [vmem:[%s1577_s1 + $0x8] sm:$0xff]  ;;  %v1335_v26 = vld [vmem:[%s1577_s1] sm:$0xff]  ;;  %s1181_s1 = smov 32   ;;  %vm667_vm12 = vcmask 261120   ;;  %vm669_vm13 = vcmask 523264  }
   0xb   :  { %850 = vmatprep.subr.mxu0 %v1172_v5  ;;  %885 = vmatprep.subr.mxu1 %v1172_v5  ;;  %vm671_vm14 = vcmask 785408   ;;  %s1184_s15 = smov [#allocation2]  }
   0xc   :  { %851 = vmatpush3.msra.mxu0 %v1234_v10  ;;  %886 = vmatpush3.msra.mxu1 %v1234_v10  ;;  %s684_s16 = sshll.u32 %s1184_s15, 4  ;;  %s685_s16 = int_to_ptr.vmem [resolvable:$true] %s684_s16 }
   0xd   :  { %852 = vmatprep.subr.mxu0 %v1172_v5  ;;  %887 = vmatprep.subr.mxu1 %v1172_v5  ;;  %s1148_s17 = scalar_lea.vmem %s685_s16, 256  ;;  %p1153_p1 = scmp.lt.s32.totalorder %s685_s16, %s685_s16 }
   0xe   :  { %1143 = vset.pattern.permute.xlu1 %v1175_v11  ;;  %1144 = vset.pattern.permute.xlu0 %v1176_v12  ;;  %p1149_p0 = scmp.ne.s32.totalorder %s685_s16, %s1148_s17  ;;  %p1154_p2 = scmp.lt.s32.totalorder %s1148_s17, %s1148_s17 }
   0xf   :  { %340 = vperm.xlu1 %1143, %v16_v4   ;;  %416 = vperm.xlu0 %1144, %v16_v4  }
  0x10   :  { %853 = vmatpush3.msra.mxu0 %v1240_v13  ;;  %888 = vmatpush3.msra.mxu1 %v1240_v13  ;;  %p1155_p3 = por %p1154_p2, %p1153_p1 }
  0x11   :  { %854 = vmatprep.subr.mxu0 %v1172_v5  ;;  %889 = vmatprep.subr.mxu1 %v1172_v5 }
  0x12   :  { %855 = vmatpush3.msra.mxu0 %v1248_v14  ;;  %890 = vmatpush3.msra.mxu1 %v1248_v14  ;;  %p1156_p4 = pnand %p1155_p3, %p1149_p0 }
  0x13   :  { %1145 = vset.pattern.permute.xlu1 %v1177_v15  ;;  %856 = vmatprep.subr.mxu0 %v1172_v5 }
  0x14   :  { %492 = vperm.xlu1 %1145, %v16_v4   ;;  %857 = vmatpush3.msra.mxu0 %v1257_v16 }
  0x15   :  { %858 = vmatprep.subr.mxu0 %v1172_v5  ;;  %891 = vmatprep.subr.mxu1 %v1172_v5 }
  0x16   :  { %859 = vmatpush3.msra.mxu0 %v1264_v17  ;;  %892 = vmatpush3.msra.mxu1 %v1257_v16 }
  0x17   :  { %860 = vmatprep.subr.mxu0 %v1172_v5  ;;  %893 = vmatprep.subr.mxu1 %v1172_v5 }
  0x18   :  { %1146 = vset.pattern.permute.xlu1 %v1178_v19  ;;  %861 = vmatpush3.msra.mxu0 %v1273_v18 }
  0x19   :  { %568 = vperm.xlu1 %1146, %v16_v4   ;;  %862 = vmatprep.subr.mxu0 %v1172_v5 }
  0x1a   :  { %863 = vmatpush3.msra.mxu0 %v1281_v20  ;;  %894 = vmatpush3.msra.mxu1 %v1264_v17 }
  0x1b   :  { %864 = vmatprep.subr.mxu0 %v1172_v5  ;;  %895 = vmatprep.subr.mxu1 %v1172_v5 }
  0x1c   :  { %865 = vmatpush3.msra.mxu0 %v1290_v21  ;;  %896 = vmatpush3.msra.mxu1 %v1273_v18 }
  0x1d   :  { %866 = vmatprep.subr.mxu0 %v1172_v5  ;;  %897 = vmatprep.subr.mxu1 %v1172_v5 }
  0x1e   :  { %867 = vmatpush3.msra.mxu0 %v1299_v22  ;;  %898 = vmatpush3.msra.mxu1 %v1281_v20 }
  0x1f   :  { %868 = vmatprep.subr.mxu0 %v1172_v5  ;;  %899 = vmatprep.subr.mxu1 %v1172_v5 }
  0x20   :  { %869 = vmatpush3.msra.mxu0 %v1308_v23  ;;  %900 = vmatpush3.msra.mxu1 %v1290_v21 }
  0x21   :  { %870 = vmatprep.subr.mxu0 %v1172_v5  ;;  %901 = vmatprep.subr.mxu1 %v1172_v5 }
  0x22   :  { %871 = vmatpush3.msra.mxu0 %v1317_v24  ;;  %902 = vmatpush3.msra.mxu1 %v1299_v22 }
  0x23   :  { %872 = vmatprep.subr.mxu0 %v1172_v5  ;;  %903 = vmatprep.subr.mxu1 %v1172_v5 }
  0x24   :  { %873 = vmatpush3.msra.mxu0 %v1326_v25  ;;  %904 = vmatpush3.msra.mxu1 %v1308_v23 }
  0x25   :  { %874 = vmatprep.subr.mxu0 %v1172_v5  ;;  %905 = vmatprep.subr.mxu1 %v1172_v5 }
  0x26   :  { %875 = vmatpush3.msra.mxu0 %v1335_v26  ;;  %876 = vmatprep.mubr.msk.f32.mxu0 %vm1179_vm3, %v1172_v5 }
  0x27   :  { %906 = vmatpush3.msra.mxu1 %v1317_v24  ;;  %914 = vmatprep.subr.mxu0 %v1172_v5 }
  0x28   :  { %907 = vmatprep.subr.mxu1 %v1172_v5  ;;  %911 = vmatprep.mubr.msk.f32.mxu1 %vm1179_vm3, %v1172_v5 }
  0x29   :  { %908 = vmatpush3.msra.mxu1 %v1326_v25  ;;  %1147 = vset.pattern.permute.xlu0 %v1178_v19 }
  0x2a   :  { %909 = vmatprep.subr.mxu1 %v1172_v5 }
  0x2b   :  { %910 = vmatpush3.msra.mxu1 %v1335_v26 }
  0x2c   :  { %949 = vmatprep.subr.mxu1 %v1172_v5 }
  0x80   :  { %v37_v29 = vpop.permute.xlu0 %36  ;;  %v189_v32 = vpop.permute.xlu1 %188 }
  0x81   :  { %vm38_vm4 = vcmp.eq.s32.totalorder %v37_v29, %v1353_v28  ;;  %vm190_vm6 = vcmp.eq.s32.totalorder %v189_v32, %v1353_v28 }
  0x82   :  { %877 = vmatmul.mubr.msk.f32.vlgmr.msra.gmra.mxu0 %vm38_vm4, %v1180_v30 }
  0x83   :  { %915 = vmatpush3.msra.mxu0 %v1206_v3  ;;  %946 = vmatprep.mubr.msk.f32.mxu0 %vm1179_vm3, %v1172_v5 }
  0x84   :  { %916 = vmatprep.subr.mxu0 %v1172_v5 }
  0x85   :  { %917 = vmatpush3.msra.mxu0 %v1213_v6  ;;  %v113_v31 = vpop.permute.xlu0 %112  ;;  %v265_v33 = vpop.permute.xlu1 %264 }
  0x86   :  { %918 = vmatprep.subr.mxu0 %v1172_v5  ;;  %vm114_vm5 = vcmp.eq.s32.totalorder %v113_v31, %v1353_v28  ;;  %vm266_vm7 = vcmp.eq.s32.totalorder %v265_v33, %v1353_v28 }
  0x87   :  { %919 = vmatpush3.msra.mxu0 %v1224_v9  ;;  %912 = vmatmul.mubr.msk.f32.vlgmr.msra.gmra.mxu1 %vm114_vm5, %v1180_v30 }
  0x88   :  { %920 = vmatprep.subr.mxu0 %v1172_v5  ;;  %950 = vmatpush3.msra.mxu1 %v1206_v3 }
  0x89   :  { %921 = vmatpush3.msra.mxu0 %v1234_v10  ;;  %951 = vmatprep.subr.mxu1 %v1172_v5 }
  0x8a   :  { %922 = vmatprep.subr.mxu0 %v1172_v5  ;;  %952 = vmatpush3.msra.mxu1 %v1213_v6  ;;  %v341_v34 = vpop.permute.xlu1 %340  ;;  %v417_v35 = vpop.permute.xlu0 %416 }
  0x8b   :  { %923 = vmatpush3.msra.mxu0 %v1240_v13  ;;  %953 = vmatprep.subr.mxu1 %v1172_v5  ;;  %vm342_vm8 = vcmp.eq.s32.totalorder %v341_v34, %v1353_v28  ;;  %vm418_vm9 = vcmp.eq.s32.totalorder %v417_v35, %v1353_v28 }
  0x8c   :  { %924 = vmatprep.subr.mxu0 %v1172_v5  ;;  %954 = vmatpush3.msra.mxu1 %v1224_v9 }
  0x8d   :  { %925 = vmatpush3.msra.mxu0 %v1248_v14  ;;  %955 = vmatprep.subr.mxu1 %v1172_v5 }
  0x8e   :  { %926 = vmatprep.subr.mxu0 %v1172_v5  ;;  %956 = vmatpush3.msra.mxu1 %v1234_v10 }
  0x8f   :  { %927 = vmatpush3.msra.mxu0 %v1257_v16  ;;  %957 = vmatprep.subr.mxu1 %v1172_v5  ;;  %v493_v36 = vpop.permute.xlu1 %492 }
  0x90   :  { %928 = vmatprep.subr.mxu0 %v1172_v5  ;;  %958 = vmatpush3.msra.mxu1 %v1240_v13  ;;  %vm494_vm10 = vcmp.eq.s32.totalorder %v493_v36, %v1353_v28 }
  0x91   :  { %929 = vmatpush3.msra.mxu0 %v1264_v17  ;;  %959 = vmatprep.subr.mxu1 %v1172_v5 }
  0x92   :  { %930 = vmatprep.subr.mxu0 %v1172_v5  ;;  %960 = vmatpush3.msra.mxu1 %v1248_v14 }
  0x93   :  { %931 = vmatpush3.msra.mxu0 %v1273_v18  ;;  %961 = vmatprep.subr.mxu1 %v1172_v5 }
  0x94   :  { %932 = vmatprep.subr.mxu0 %v1172_v5  ;;  %962 = vmatpush3.msra.mxu1 %v1257_v16  ;;  %v569_v37 = vpop.permute.xlu1 %568 }
  0x95   :  { %933 = vmatpush3.msra.mxu0 %v1281_v20  ;;  %963 = vmatprep.subr.mxu1 %v1172_v5  ;;  %vm570_vm11 = vcmp.eq.s32.totalorder %v569_v37, %v1353_v28 }
  0x96   :  { %934 = vmatprep.subr.mxu0 %v1172_v5  ;;  %964 = vmatpush3.msra.mxu1 %v1264_v17 }
  0x97   :  { %935 = vmatpush3.msra.mxu0 %v1290_v21  ;;  %965 = vmatprep.subr.mxu1 %v1172_v5 }
  0x98   :  { %936 = vmatprep.subr.mxu0 %v1172_v5  ;;  %966 = vmatpush3.msra.mxu1 %v1273_v18 }
  0x99   :  { %937 = vmatpush3.msra.mxu0 %v1299_v22  ;;  %967 = vmatprep.subr.mxu1 %v1172_v5 }
  0x9a   :  { %938 = vmatprep.subr.mxu0 %v1172_v5  ;;  %968 = vmatpush3.msra.mxu1 %v1281_v20 }
  0x9b   :  { %939 = vmatpush3.msra.mxu0 %v1308_v23  ;;  %969 = vmatprep.subr.mxu1 %v1172_v5 }
  0x9c   :  { %940 = vmatprep.subr.mxu0 %v1172_v5  ;;  %970 = vmatpush3.msra.mxu1 %v1290_v21 }
  0x9d   :  { %941 = vmatpush3.msra.mxu0 %v1317_v24  ;;  %971 = vmatprep.subr.mxu1 %v1172_v5 }
  0x9e   :  { %942 = vmatprep.subr.mxu0 %v1172_v5  ;;  %972 = vmatpush3.msra.mxu1 %v1299_v22 }
  0x9f   :  { %943 = vmatpush3.msra.mxu0 %v1326_v25  ;;  %973 = vmatprep.subr.mxu1 %v1172_v5 }
  0xa0   :  { %944 = vmatprep.subr.mxu0 %v1172_v5  ;;  %974 = vmatpush3.msra.mxu1 %v1308_v23 }
  0xa1   :  { %945 = vmatpush3.msra.mxu0 %v1335_v26  ;;  %975 = vmatprep.subr.mxu1 %v1172_v5 }
  0xa2   :  { %947 = vmatmul.mubr.msk.f32.vlgmr.msra.gmra.mxu0 %vm190_vm6, %v1180_v30  ;;  %976 = vmatpush3.msra.mxu1 %v1317_v24 }
  0xa3   :  { %984 = vmatprep.subr.mxu0 %v1172_v5  ;;  %977 = vmatprep.subr.mxu1 %v1172_v5 }
  0xa4   :  { %985 = vmatpush3.msra.mxu0 %v1206_v3  ;;  %978 = vmatpush3.msra.mxu1 %v1326_v25 }
  0xa5   :  { %986 = vmatprep.subr.mxu0 %v1172_v5  ;;  %979 = vmatprep.subr.mxu1 %v1172_v5 }
  0xa6   :  { %987 = vmatpush3.msra.mxu0 %v1213_v6  ;;  %980 = vmatpush3.msra.mxu1 %v1335_v26 }
  0xa7   :  { %981 = vmatprep.mubr.msk.f32.mxu1 %vm1179_vm3, %v1172_v5  ;;  %988 = vmatprep.subr.mxu0 %v1172_v5 }
  0xa8   :  { %982 = vmatmul.mubr.msk.f32.vlgmr.msra.gmra.mxu1 %vm266_vm7, %v1180_v30  ;;  %989 = vmatpush3.msra.mxu0 %v1224_v9 }
  0xa9   :  { %1019 = vmatprep.subr.mxu1 %v1172_v5  ;;  %990 = vmatprep.subr.mxu0 %v1172_v5 }
  0xaa   :  { %1020 = vmatpush3.msra.mxu1 %v1206_v3  ;;  %991 = vmatpush3.msra.mxu0 %v1234_v10 }
  0xab   :  { %1021 = vmatprep.subr.mxu1 %v1172_v5  ;;  %992 = vmatprep.subr.mxu0 %v1172_v5 }
  0xac   :  { %1022 = vmatpush3.msra.mxu1 %v1213_v6  ;;  %993 = vmatpush3.msra.mxu0 %v1240_v13 }
  0xad   :  { %1023 = vmatprep.subr.mxu1 %v1172_v5  ;;  %994 = vmatprep.subr.mxu0 %v1172_v5 }
  0xae   :  { %1024 = vmatpush3.msra.mxu1 %v1224_v9  ;;  %995 = vmatpush3.msra.mxu0 %v1248_v14 }
  0xaf   :  { %1025 = vmatprep.subr.mxu1 %v1172_v5  ;;  %996 = vmatprep.subr.mxu0 %v1172_v5 }
  0xb0   :  { %1026 = vmatpush3.msra.mxu1 %v1234_v10  ;;  %997 = vmatpush3.msra.mxu0 %v1257_v16 }
  0xb1   :  { %1027 = vmatprep.subr.mxu1 %v1172_v5  ;;  %998 = vmatprep.subr.mxu0 %v1172_v5 }
  0xb2   :  { %1028 = vmatpush3.msra.mxu1 %v1240_v13  ;;  %999 = vmatpush3.msra.mxu0 %v1264_v17 }
  0xb3   :  { %1029 = vmatprep.subr.mxu1 %v1172_v5  ;;  %1000 = vmatprep.subr.mxu0 %v1172_v5 }
  0xb4   :  { %1030 = vmatpush3.msra.mxu1 %v1248_v14  ;;  %1001 = vmatpush3.msra.mxu0 %v1273_v18 }
  0xb5   :  { %1031 = vmatprep.subr.mxu1 %v1172_v5  ;;  %1002 = vmatprep.subr.mxu0 %v1172_v5 }
  0xb6   :  { %1032 = vmatpush3.msra.mxu1 %v1257_v16  ;;  %1003 = vmatpush3.msra.mxu0 %v1281_v20 }
  0xb7   :  { %1033 = vmatprep.subr.mxu1 %v1172_v5  ;;  %1004 = vmatprep.subr.mxu0 %v1172_v5 }
  0xb8   :  { %1034 = vmatpush3.msra.mxu1 %v1264_v17  ;;  %1005 = vmatpush3.msra.mxu0 %v1290_v21 }
  0xb9   :  { %1035 = vmatprep.subr.mxu1 %v1172_v5  ;;  %1006 = vmatprep.subr.mxu0 %v1172_v5 }
  0xba   :  { %1036 = vmatpush3.msra.mxu1 %v1273_v18  ;;  %1007 = vmatpush3.msra.mxu0 %v1299_v22 }
  0xbb   :  { %1037 = vmatprep.subr.mxu1 %v1172_v5  ;;  %1008 = vmatprep.subr.mxu0 %v1172_v5 }
  0xbc   :  { %1038 = vmatpush3.msra.mxu1 %v1281_v20  ;;  %1009 = vmatpush3.msra.mxu0 %v1308_v23 }
  0xbd   :  { %1039 = vmatprep.subr.mxu1 %v1172_v5  ;;  %1010 = vmatprep.subr.mxu0 %v1172_v5 }
  0xbe   :  { %1040 = vmatpush3.msra.mxu1 %v1290_v21  ;;  %1011 = vmatpush3.msra.mxu0 %v1317_v24 }
  0xbf   :  { %1041 = vmatprep.subr.mxu1 %v1172_v5  ;;  %1012 = vmatprep.subr.mxu0 %v1172_v5 }
  0xc0   :  { %1042 = vmatpush3.msra.mxu1 %v1299_v22  ;;  %1013 = vmatpush3.msra.mxu0 %v1326_v25 }
  0xc1   :  { %1043 = vmatprep.subr.mxu1 %v1172_v5  ;;  %1014 = vmatprep.subr.mxu0 %v1172_v5 }
  0xc2   :  { %1044 = vmatpush3.msra.mxu1 %v1308_v23  ;;  %1015 = vmatpush3.msra.mxu0 %v1335_v26 }
  0xc3   :  { %1016 = vmatprep.mubr.msk.f32.mxu0 %vm1179_vm3, %v1172_v5  ;;  %1045 = vmatprep.subr.mxu1 %v1172_v5 }
  0xc4   :  { %1017 = vmatmul.mubr.msk.f32.vlgmr.msra.gmra.mxu0 %vm342_vm8, %v1180_v30  ;;  %1046 = vmatpush3.msra.mxu1 %v1317_v24 }
  0xc5   :  { %1054 = vmatprep.subr.mxu0 %v1172_v5  ;;  %1047 = vmatprep.subr.mxu1 %v1172_v5 }
  0xc6   :  { %1055 = vmatpush3.msra.mxu0 %v1206_v3  ;;  %1048 = vmatpush3.msra.mxu1 %v1326_v25 }
  0xc7   :  { %1056 = vmatprep.subr.mxu0 %v1172_v5  ;;  %1049 = vmatprep.subr.mxu1 %v1172_v5 }
  0xc8   :  { %1057 = vmatpush3.msra.mxu0 %v1213_v6  ;;  %1050 = vmatpush3.msra.mxu1 %v1335_v26 }
  0xc9   :  { %1051 = vmatprep.mubr.msk.f32.mxu1 %vm1179_vm3, %v1172_v5  ;;  %1058 = vmatprep.subr.mxu0 %v1172_v5 }
  0xca   :  { %1052 = vmatmul.mubr.msk.f32.vlgmr.msra.gmra.mxu1 %vm418_vm9, %v1180_v30  ;;  %1059 = vmatpush3.msra.mxu0 %v1224_v9 }
  0xcb   :  { %1089 = vmatprep.subr.mxu1 %v1172_v5  ;;  %1060 = vmatprep.subr.mxu0 %v1172_v5 }
  0xcc   :  { %1090 = vmatpush3.msra.mxu1 %v1206_v3  ;;  %1061 = vmatpush3.msra.mxu0 %v1234_v10 }
  0xcd   :  { %1091 = vmatprep.subr.mxu1 %v1172_v5  ;;  %1062 = vmatprep.subr.mxu0 %v1172_v5 }
  0xce   :  { %1092 = vmatpush3.msra.mxu1 %v1213_v6  ;;  %1063 = vmatpush3.msra.mxu0 %v1240_v13 }
  0xcf   :  { %1093 = vmatprep.subr.mxu1 %v1172_v5  ;;  %1064 = vmatprep.subr.mxu0 %v1172_v5 }
  0xd0   :  { %1094 = vmatpush3.msra.mxu1 %v1224_v9  ;;  %1065 = vmatpush3.msra.mxu0 %v1248_v14 }
  0xd1   :  { %1095 = vmatprep.subr.mxu1 %v1172_v5  ;;  %1066 = vmatprep.subr.mxu0 %v1172_v5 }
  0xd2   :  { %1096 = vmatpush3.msra.mxu1 %v1234_v10  ;;  %1067 = vmatpush3.msra.mxu0 %v1257_v16 }
  0xd3   :  { %1097 = vmatprep.subr.mxu1 %v1172_v5  ;;  %1068 = vmatprep.subr.mxu0 %v1172_v5 }
  0xd4   :  { %1098 = vmatpush3.msra.mxu1 %v1240_v13  ;;  %1069 = vmatpush3.msra.mxu0 %v1264_v17 }
  0xd5   :  { %1099 = vmatprep.subr.mxu1 %v1172_v5  ;;  %1070 = vmatprep.subr.mxu0 %v1172_v5 }
  0xd6   :  { %1100 = vmatpush3.msra.mxu1 %v1248_v14  ;;  %1071 = vmatpush3.msra.mxu0 %v1273_v18 }
  0xd7   :  { %1101 = vmatprep.subr.mxu1 %v1172_v5  ;;  %1072 = vmatprep.subr.mxu0 %v1172_v5 }
  0xd8   :  { %1102 = vmatpush3.msra.mxu1 %v1257_v16  ;;  %1073 = vmatpush3.msra.mxu0 %v1281_v20 }
  0xd9   :  { %1103 = vmatprep.subr.mxu1 %v1172_v5  ;;  %1074 = vmatprep.subr.mxu0 %v1172_v5 }
  0xda   :  { %1104 = vmatpush3.msra.mxu1 %v1264_v17  ;;  %1075 = vmatpush3.msra.mxu0 %v1290_v21 }
  0xdb   :  { %1105 = vmatprep.subr.mxu1 %v1172_v5  ;;  %1076 = vmatprep.subr.mxu0 %v1172_v5 }
  0xdc   :  { %1106 = vmatpush3.msra.mxu1 %v1273_v18  ;;  %1077 = vmatpush3.msra.mxu0 %v1299_v22 }
  0xdd   :  { %1107 = vmatprep.subr.mxu1 %v1172_v5  ;;  %1078 = vmatprep.subr.mxu0 %v1172_v5 }
  0xde   :  { %1108 = vmatpush3.msra.mxu1 %v1281_v20  ;;  %1079 = vmatpush3.msra.mxu0 %v1308_v23 }
  0xdf   :  { %1109 = vmatprep.subr.mxu1 %v1172_v5  ;;  %1080 = vmatprep.subr.mxu0 %v1172_v5 }
  0xe0   :  { %1110 = vmatpush3.msra.mxu1 %v1290_v21  ;;  %1081 = vmatpush3.msra.mxu0 %v1317_v24 }
  0xe1   :  { %1111 = vmatprep.subr.mxu1 %v1172_v5  ;;  %1082 = vmatprep.subr.mxu0 %v1172_v5 }
  0xe2   :  { %1112 = vmatpush3.msra.mxu1 %v1299_v22  ;;  %1083 = vmatpush3.msra.mxu0 %v1326_v25 }
  0xe3   :  { %1113 = vmatprep.subr.mxu1 %v1172_v5  ;;  %1084 = vmatprep.subr.mxu0 %v1172_v5 }
  0xe4   :  { %1114 = vmatpush3.msra.mxu1 %v1308_v23  ;;  %1085 = vmatpush3.msra.mxu0 %v1335_v26 }
  0xe5   :  { %1086 = vmatprep.mubr.msk.f32.mxu0 %vm1179_vm3, %v1172_v5  ;;  %1115 = vmatprep.subr.mxu1 %v1172_v5 }
  0xe6   :  { %1087 = vmatmul.mubr.msk.f32.vlgmr.msra.gmra.mxu0 %vm494_vm10, %v1180_v30  ;;  %1116 = vmatpush3.msra.mxu1 %v1317_v24 }
  0xe7   :  { %1117 = vmatprep.subr.mxu1 %v1172_v5  ;;  %1121 = vmatprep.mubr.msk.f32.mxu1 %vm1179_vm3, %v1172_v5 }
  0xe8   :  { %1118 = vmatpush3.msra.mxu1 %v1326_v25 }
  0xe9   :  { %1119 = vmatprep.subr.mxu1 %v1172_v5 }
  0xea   :  { %1120 = vmatpush3.msra.mxu1 %v1335_v26 }
  0xeb   :  { %1122 = vmatmul.mubr.msk.f32.vlgmr.msra.gmra.mxu1 %vm570_vm11, %v1180_v30 }
 0x142   :  { %v107_v38 = vpop.f32.mrf.mxu0 }
 0x144   :  { %v878_v39 = vpop.f32.mrf.mxu0 }
 0x147   :  { %v183_v40 = vpop.f32.mrf.mxu1 }
 0x148   :  { %644 = vrot.lane.b32.xlu0 %v183_v40, %s1181_s1 }
 0x149   :  { %v913_v41 = vpop.f32.mrf.mxu1 }
 0x162   :  { %v259_v42 = vpop.f32.mrf.mxu0 }
 0x163   :  { %648 = vrot.lane.b32.xlu0 %v259_v42, %s1182_s13 }
 0x164   :  { %v948_v43 = vpop.f32.mrf.mxu0 }
 0x168   :  { %v335_v44 = vpop.f32.mrf.mxu1 }
 0x169   :  { %652 = vrot.lane.b32.xlu0 %v335_v44, %s1183_s14 }
 0x16a   :  { %v983_v45 = vpop.f32.mrf.mxu1 }
 0x184   :  { %v411_v46 = vpop.f32.mrf.mxu0 }
 0x186   :  { %v1018_v47 = vpop.f32.mrf.mxu0 }
 0x18a   :  { %v487_v48 = vpop.f32.mrf.mxu1 }
 0x18b   :  { %656 = vrot.lane.b32.xlu1 %v487_v48, %s1181_s1 }
 0x18c   :  { %v1053_v49 = vpop.f32.mrf.mxu1 }
 0x1a6   :  { %v563_v50 = vpop.f32.mrf.mxu0 }
 0x1a7   :  { %660 = vrot.lane.b32.xlu1 %v563_v50, %s1182_s13 }
 0x1a8   :  { %v1088_v51 = vpop.f32.mrf.mxu0 }
 0x1ab   :  { %v639_v52 = vpop.f32.mrf.mxu1 }
 0x1ac   :  { %664 = vrot.lane.b32.xlu1 %v639_v52, %s1183_s14 }
 0x1ad   :  { %v1123_v53 = vpop.f32.mrf.mxu1 }
 0x1ba   :  { %v645_v54 = vpop.permute.xlu0 %644 }
 0x1bb   :  { %v668_v56 = vsel %vm667_vm12, %v107_v38, %v645_v54 }
 0x1d5   :  { %v649_v55 = vpop.permute.xlu0 %648 }
 0x1d6   :  { %v670_v57 = vsel %vm669_vm13, %v668_v56, %v649_v55 }
 0x1db   :  { %v653_v58 = vpop.permute.xlu0 %652 }
 0x1dc   :  { %v672_v59 = vsel %vm671_vm14, %v670_v57, %v653_v58 }
 0x1dd   :  { %676 = vst [vmem:[#allocation2] sm:$0xff] %v672_v59 }
 0x1fd   :  { %v657_v60 = vpop.permute.xlu1 %656 }
 0x1fe   :  { %v673_v62 = vsel %vm667_vm12, %v411_v46, %v657_v60 }
 0x219   :  { %v661_v61 = vpop.permute.xlu1 %660 }
 0x21a   :  { %v674_v63 = vsel %vm669_vm13, %v673_v62, %v661_v61 }
 0x21e   :  { %v665_v0 = vpop.permute.xlu1 %664 }
 0x21f   :  { %v675_v1 = vsel %vm671_vm14, %v674_v63, %v665_v0 }
 0x220   :  { %677 = vst [vmem:[#allocation2 + $0x8] sm:$0xff] %v675_v1 }
 0x221   :  { %1159 = shalt.err (!%p1156_p4)
}
 0x222   :  { %687 = dma.vmem_to_hbm [thread:$0]  %s685_s16, 256, %s1578_s2, [#allocation3]  }
 0x223   :  { %1168 = dma.done.wait [#allocation3], 256  }
 0x224   :  { %1169 = vsyncadd [#allocation3], 4294967040 }
 0x225   :  { %691 = vsyncpa [#allocation3], 1 }

</bundles_post_ra>
